<compile_context>
chip_gen: v7x
topology: tpu7x:2x2x1
jax: 0.10.0
libtpu: 0.0.40
codegen_flags: <defaults>
</compile_context>

<pallas_src>
import math
import functools

import jax
import jax.numpy as jnp
from jax.experimental import pallas as pl
from jax.experimental.pallas import tpu as pltpu

KERNEL_SIZES = (3, 5, 7)  # the `kernel_size` list from series_decomp_multi.__init__


def _pad_counts(k):
    end = (k - 1) // 2
    front = (k - 1) - end
    return front, end


def _vmem_capacity_bytes():
    try:
        return int(pltpu.get_tpu_info().vmem_capacity_bytes)
    except Exception:
        return 64 << 20  # conservative fallback: v7x per-TensorCore VMEM


def _pick_dt(L, D, itemsize, target_block_bytes):
    """Channel-tile width.  Full D when it fits (contiguous HBM bursts)."""
    full_block = L * D * itemsize
    if D % 128 != 0 or full_block <= target_block_bytes:
        # TODO(synk): for D % 128 != 0 a wrapper transpose could pack batches
        # into the lane axis (only pays off where compute binds, e.g. v7x).
        return D
    for cand in (1024, 512, 256, 128):
        if D % cand == 0 and L * cand * itemsize <= target_block_bytes:
            return cand
    return 128


def _pick_bt(B, per_batch_bytes, n_d, target_block_bytes):
    """Batch-tile size: biggest divisor of B within budget, but keep the grid
    at >= 8 (or >= 2) steps for v7x's two TensorCores while blocks stay large."""
    divisors = [d for d in range(1, B + 1) if B % d == 0]
    fitting = [d for d in divisors if d * per_batch_bytes <= target_block_bytes] or [1]
    floor_bytes = max(per_batch_bytes, target_block_bytes // 4)
    for want_steps in (8, 2):
        cands = [d for d in fitting
                 if n_d * (B // d) >= want_steps
                 and d * per_batch_bytes >= floor_bytes]
        if cands:
            return max(cands)
    return max(fitting)


def _decomp_kernel(x_ref, w_ref, b_ref, res_ref, mean_ref, *, kernels, L):
    """One (Bt, L, Dt) tile per grid step.

    x_ref:   (Bt, L, Dt) input tile
    w_ref:   (M,) SMEM -- Linear(1, M).weight[:, 0]
    b_ref:   (M,) SMEM -- Linear(1, M).bias
    res_ref, mean_ref: (Bt, L, Dt) outputs
    """
    Bt, _, Dt = x_ref.shape
    M = len(kernels)

    halves = [_pad_counts(k) for k in kernels]          # (front, end) per kernel
    f_max = max(f for f, _ in halves)
    e_max = max(e for _, e in halves)

    x = x_ref[...]                                      # single HBM->VMEM read

    # Edge replications (PyTorch's front/end repeat), broadcast ONCE per tile
    # and sliced per tap (JAX does not CSE broadcast_in_dim).
    first_pad = (jnp.broadcast_to(x[:, 0:1, :], (Bt, f_max, Dt))
                 if f_max > 0 else None)
    last_pad = (jnp.broadcast_to(x[:, L - 1:L, :], (Bt, e_max, Dt))
                if e_max > 0 else None)

    def tap(s):
        # tap[:, i, :] == x[:, clamp(i + s, 0, L - 1), :]   (pure value op;
        # no scratch round-trip, lowers to sublane shifts on the idle XLU).
        if s == 0:
            return x
        if s > 0:
            return jnp.concatenate([x[:, s:, :], last_pad[:, :s, :]], axis=1)
        return jnp.concatenate([first_pad[:, :(-s), :], x[:, :L + s, :]], axis=1)

    # Stable-softmax max over the M logits.  Logits are recomputed inside the
    # exp below (2 VPU ops) so only `mx` stays live instead of M logit tiles.
    mx = x * w_ref[0] + b_ref[0]
    for m in range(1, M):
        mx = jnp.maximum(mx, x * w_ref[m] + b_ref[m])

    # Process kernels smallest-first: windows are nested, so each kernel only
    # adds its newly exposed outer taps to the running sum `acc`, and its
    # softmax-weighted average folds into `num` immediately.  Live full-tile
    # temporaries: x, mx, acc, num, den (+1 transient).
    order = sorted(range(M), key=lambda m: kernels[m])
    acc = x                    # running tap sum; starts with the s == 0 tap
    cov_f = cov_e = 0          # offsets in [-cov_f, cov_e] already accumulated
    num = None
    den = None
    for m in order:
        k = kernels[m]
        f, e = halves[m]
        for s in range(-f, -cov_f):          # newly exposed front taps
            acc = acc + tap(s)
        for s in range(cov_e + 1, e + 1):    # newly exposed end taps
            acc = acc + tap(s)
        cov_f, cov_e = f, e
        w_m = jnp.exp(x * w_ref[m] + b_ref[m] - mx)
        den = w_m if den is None else den + w_m
        contrib = acc * (w_m * (1.0 / k))
        num = contrib if num is None else num + contrib

    mean = num / den           # exact divide; approx reciprocal not worth ~1e-4
    mean_ref[...] = mean.astype(mean_ref.dtype)
    res_ref[...] = (x - mean).astype(res_ref.dtype)


def series_decomp_multi(x, weight, bias, kernels=KERNEL_SIZES):
    """x: (B, L, D) float32; weight: (M,) = Linear(1,M).weight[:,0]; bias: (M,)."""
    B, L, D = x.shape
    itemsize = x.dtype.itemsize

    capacity = _vmem_capacity_bytes()
    # Peak VMEM ~= 16 block-sized buffers (input x2 + two outputs x2 double-
    # buffered + ~5 full-tile temporaries + transients); budget so that stays
    # comfortably inside this generation's VMEM.
    target_block_bytes = max(1 << 20, min(4 << 20, capacity // 24))
    vmem_limit = min((capacity * 3) // 4, 96 << 20)

    Dt = _pick_dt(L, D, itemsize, target_block_bytes)
    n_d = D // Dt
    Bt = _pick_bt(B, L * Dt * itemsize, n_d, target_block_bytes)
    grid = (B // Bt, n_d)

    kernel_fn = functools.partial(
        _decomp_kernel, kernels=tuple(int(k) for k in kernels), L=L)

    res, mean = pl.pallas_call(
        kernel_fn,
        out_shape=(jax.ShapeDtypeStruct((B, L, D), x.dtype),
                   jax.ShapeDtypeStruct((B, L, D), x.dtype)),
        grid=grid,
        in_specs=[
            pl.BlockSpec((Bt, L, Dt), lambda b, d: (b, 0, d)),
            pl.BlockSpec(memory_space=pltpu.MemorySpace.SMEM),
            pl.BlockSpec(memory_space=pltpu.MemorySpace.SMEM),
        ],
        out_specs=(
            pl.BlockSpec((Bt, L, Dt), lambda b, d: (b, 0, d)),
            pl.BlockSpec((Bt, L, Dt), lambda b, d: (b, 0, d)),
        ),
        compiler_params=pltpu.CompilerParams(
            dimension_semantics=("parallel", "parallel"),
            vmem_limit_bytes=vmem_limit),
    )(x, weight, bias)
    return res, mean


def _reference(x, weight, bias, kernels=KERNEL_SIZES):
    """Pure-JAX reference matching the PyTorch forward."""
    B, L, D = x.shape
    means = []
    for k in kernels:
        f, e = _pad_counts(k)
        xp = jnp.concatenate(
            [jnp.repeat(x[:, :1, :], f, axis=1),
             x,
             jnp.repeat(x[:, -1:, :], e, axis=1)], axis=1)
        avg = jnp.mean(
            jnp.stack([xp[:, j:j + L, :] for j in range(k)], axis=0), axis=0)
        means.append(avg)
    mm = jnp.stack(means, axis=-1)                          # (B, L, D, M)
    logits = x[..., None] * weight + bias                   # (B, L, D, M)
    w_soft = jax.nn.softmax(logits, axis=-1)
    mean = jnp.sum(mm * w_soft, axis=-1)
    return x - mean, mean


if __name__ == "__main__":
    key = jax.random.PRNGKey(0)
    kx, kw, kb = jax.random.split(key, 3)

    B, L, D = 2, 16, 32
    M = len(KERNEL_SIZES)

    x = jax.random.normal(kx, (B, L, D), dtype=jnp.float32)
    # Deterministic stand-in for nn.Linear(1, M) parameters (not a checkpoint).
    bound = 1.0 / math.sqrt(1.0)
    weight = jax.random.uniform(kw, (M,), jnp.float32, -bound, bound)
    bias = jax.random.uniform(kb, (M,), jnp.float32, -bound, bound)

    res, mean = series_decomp_multi(x, weight, bias)
    jax.block_until_ready((res, mean))

    res_ref, mean_ref = _reference(x, weight, bias)
    # Exact softmax divide in-kernel; only summation-order / transcendental
    # ULP differences remain (~1e-6 for O(1) values), so 1e-4 is comfortable.
    assert jnp.allclose(mean, mean_ref, atol=1e-4, rtol=1e-4)
    assert jnp.allclose(res, res_ref, atol=1e-4, rtol=1e-4)

    print("KERNEL_OK")
</pallas_src>

<mosaic_0001>
module attributes {stable_mosaic.version = 11 : i64} {
  func.func @_decomp_kernel(%arg0: i32, %arg1: i32, %arg2: memref<2x16x32xf32, #tpu.memory_space<vmem>>, %arg3: memref<3xf32, #tpu.memory_space<smem>>, %arg4: memref<3xf32, #tpu.memory_space<smem>>, %arg5: memref<2x16x32xf32, #tpu.memory_space<vmem>>, %arg6: memref<2x16x32xf32, #tpu.memory_space<vmem>>) attributes {dimension_semantics = [#tpu.dimension_semantics<parallel>, #tpu.dimension_semantics<parallel>], iteration_bounds = array<i64: 1, 1>, scalar_prefetch = 0 : i64, scratch_operands = 0 : i64, tpu.core_type = #tpu.core_type<tc>, window_params = [{transform_indices = @transform_0, window_bounds = array<i64: 2, 16, 32>}, {transform_indices = @transform_1, window_bounds = array<i64: 3>}, {transform_indices = @transform_2, window_bounds = array<i64: 3>}, {transform_indices = @transform_3, window_bounds = array<i64: 2, 16, 32>}, {transform_indices = @transform_4, window_bounds = array<i64: 2, 16, 32>}]} {
    %c0 = arith.constant 0 : index
    %c0_0 = arith.constant 0 : index
    %c0_1 = arith.constant 0 : index
    %0 = vector.load %arg2[%c0, %c0_0, %c0_1] : memref<2x16x32xf32, #tpu.memory_space<vmem>>, vector<2x16x32xf32>
    %1 = vector.extract_strided_slice %0 {offsets = [0, 0, 0], sizes = [2, 1, 32], strides = [1, 1, 1]} : vector<2x16x32xf32> to vector<2x1x32xf32>
    %2 = vector.shape_cast %1 : vector<2x1x32xf32> to vector<2x1x32xf32>
    %3 = vector.broadcast %2 : vector<2x1x32xf32> to vector<2x3x32xf32>
    %4 = vector.extract_strided_slice %0 {offsets = [0, 15, 0], sizes = [2, 1, 32], strides = [1, 1, 1]} : vector<2x16x32xf32> to vector<2x1x32xf32>
    %5 = vector.shape_cast %4 : vector<2x1x32xf32> to vector<2x1x32xf32>
    %6 = vector.broadcast %5 : vector<2x1x32xf32> to vector<2x3x32xf32>
    %c0_2 = arith.constant 0 : index
    %7 = memref.load %arg3[%c0_2] : memref<3xf32, #tpu.memory_space<smem>>
    %8 = vector.broadcast %7 : f32 to vector<2x16x32xf32>
    %9 = arith.mulf %0, %8 : vector<2x16x32xf32>
    %c0_3 = arith.constant 0 : index
    %10 = memref.load %arg4[%c0_3] : memref<3xf32, #tpu.memory_space<smem>>
    %11 = vector.broadcast %10 : f32 to vector<2x16x32xf32>
    %12 = arith.addf %9, %11 : vector<2x16x32xf32>
    %c1 = arith.constant 1 : index
    %13 = memref.load %arg3[%c1] : memref<3xf32, #tpu.memory_space<smem>>
    %14 = vector.broadcast %13 : f32 to vector<2x16x32xf32>
    %15 = arith.mulf %0, %14 : vector<2x16x32xf32>
    %c1_4 = arith.constant 1 : index
    %16 = memref.load %arg4[%c1_4] : memref<3xf32, #tpu.memory_space<smem>>
    %17 = vector.broadcast %16 : f32 to vector<2x16x32xf32>
    %18 = arith.addf %15, %17 : vector<2x16x32xf32>
    %19 = arith.maximumf %12, %18 : vector<2x16x32xf32>
    %c2 = arith.constant 2 : index
    %20 = memref.load %arg3[%c2] : memref<3xf32, #tpu.memory_space<smem>>
    %21 = vector.broadcast %20 : f32 to vector<2x16x32xf32>
    %22 = arith.mulf %0, %21 : vector<2x16x32xf32>
    %c2_5 = arith.constant 2 : index
    %23 = memref.load %arg4[%c2_5] : memref<3xf32, #tpu.memory_space<smem>>
    %24 = vector.broadcast %23 : f32 to vector<2x16x32xf32>
    %25 = arith.addf %22, %24 : vector<2x16x32xf32>
    %26 = arith.maximumf %19, %25 : vector<2x16x32xf32>
    %27 = vector.extract_strided_slice %3 {offsets = [0, 0, 0], sizes = [2, 1, 32], strides = [1, 1, 1]} : vector<2x3x32xf32> to vector<2x1x32xf32>
    %28 = vector.extract_strided_slice %0 {offsets = [0, 0, 0], sizes = [2, 15, 32], strides = [1, 1, 1]} : vector<2x16x32xf32> to vector<2x15x32xf32>
    %29 = tpu.concatenate %27, %28 in 1 : vector<2x1x32xf32>, vector<2x15x32xf32> -> vector<2x16x32xf32>
    %30 = arith.addf %0, %29 : vector<2x16x32xf32>
    %31 = vector.extract_strided_slice %0 {offsets = [0, 1, 0], sizes = [2, 15, 32], strides = [1, 1, 1]} : vector<2x16x32xf32> to vector<2x15x32xf32>
    %32 = vector.extract_strided_slice %6 {offsets = [0, 0, 0], sizes = [2, 1, 32], strides = [1, 1, 1]} : vector<2x3x32xf32> to vector<2x1x32xf32>
    %33 = tpu.concatenate %31, %32 in 1 : vector<2x15x32xf32>, vector<2x1x32xf32> -> vector<2x16x32xf32>
    %34 = arith.addf %30, %33 : vector<2x16x32xf32>
    %c0_6 = arith.constant 0 : index
    %35 = memref.load %arg3[%c0_6] : memref<3xf32, #tpu.memory_space<smem>>
    %36 = vector.broadcast %35 : f32 to vector<2x16x32xf32>
    %37 = arith.mulf %0, %36 : vector<2x16x32xf32>
    %c0_7 = arith.constant 0 : index
    %38 = memref.load %arg4[%c0_7] : memref<3xf32, #tpu.memory_space<smem>>
    %39 = vector.broadcast %38 : f32 to vector<2x16x32xf32>
    %40 = arith.addf %37, %39 : vector<2x16x32xf32>
    %41 = arith.subf %40, %26 : vector<2x16x32xf32>
    %42 = math.exp %41 : vector<2x16x32xf32>
    %cst = arith.constant 0.333333343 : f32
    %43 = vector.broadcast %cst : f32 to vector<2x16x32xf32>
    %44 = arith.mulf %42, %43 : vector<2x16x32xf32>
    %45 = arith.mulf %34, %44 : vector<2x16x32xf32>
    %46 = vector.extract_strided_slice %3 {offsets = [0, 0, 0], sizes = [2, 2, 32], strides = [1, 1, 1]} : vector<2x3x32xf32> to vector<2x2x32xf32>
    %47 = vector.extract_strided_slice %0 {offsets = [0, 0, 0], sizes = [2, 14, 32], strides = [1, 1, 1]} : vector<2x16x32xf32> to vector<2x14x32xf32>
    %48 = tpu.concatenate %46, %47 in 1 : vector<2x2x32xf32>, vector<2x14x32xf32> -> vector<2x16x32xf32>
    %49 = arith.addf %34, %48 : vector<2x16x32xf32>
    %50 = vector.extract_strided_slice %0 {offsets = [0, 2, 0], sizes = [2, 14, 32], strides = [1, 1, 1]} : vector<2x16x32xf32> to vector<2x14x32xf32>
    %51 = vector.extract_strided_slice %6 {offsets = [0, 0, 0], sizes = [2, 2, 32], strides = [1, 1, 1]} : vector<2x3x32xf32> to vector<2x2x32xf32>
    %52 = tpu.concatenate %50, %51 in 1 : vector<2x14x32xf32>, vector<2x2x32xf32> -> vector<2x16x32xf32>
    %53 = arith.addf %49, %52 : vector<2x16x32xf32>
    %c1_8 = arith.constant 1 : index
    %54 = memref.load %arg3[%c1_8] : memref<3xf32, #tpu.memory_space<smem>>
    %55 = vector.broadcast %54 : f32 to vector<2x16x32xf32>
    %56 = arith.mulf %0, %55 : vector<2x16x32xf32>
    %c1_9 = arith.constant 1 : index
    %57 = memref.load %arg4[%c1_9] : memref<3xf32, #tpu.memory_space<smem>>
    %58 = vector.broadcast %57 : f32 to vector<2x16x32xf32>
    %59 = arith.addf %56, %58 : vector<2x16x32xf32>
    %60 = arith.subf %59, %26 : vector<2x16x32xf32>
    %61 = math.exp %60 : vector<2x16x32xf32>
    %62 = arith.addf %42, %61 : vector<2x16x32xf32>
    %cst_10 = arith.constant 2.000000e-01 : f32
    %63 = vector.broadcast %cst_10 : f32 to vector<2x16x32xf32>
    %64 = arith.mulf %61, %63 : vector<2x16x32xf32>
    %65 = arith.mulf %53, %64 : vector<2x16x32xf32>
    %66 = arith.addf %45, %65 : vector<2x16x32xf32>
    %67 = vector.extract_strided_slice %0 {offsets = [0, 0, 0], sizes = [2, 13, 32], strides = [1, 1, 1]} : vector<2x16x32xf32> to vector<2x13x32xf32>
    %68 = tpu.concatenate %3, %67 in 1 : vector<2x3x32xf32>, vector<2x13x32xf32> -> vector<2x16x32xf32>
    %69 = arith.addf %53, %68 : vector<2x16x32xf32>
    %70 = vector.extract_strided_slice %0 {offsets = [0, 3, 0], sizes = [2, 13, 32], strides = [1, 1, 1]} : vector<2x16x32xf32> to vector<2x13x32xf32>
    %71 = tpu.concatenate %70, %6 in 1 : vector<2x13x32xf32>, vector<2x3x32xf32> -> vector<2x16x32xf32>
    %72 = arith.addf %69, %71 : vector<2x16x32xf32>
    %c2_11 = arith.constant 2 : index
    %73 = memref.load %arg3[%c2_11] : memref<3xf32, #tpu.memory_space<smem>>
    %74 = vector.broadcast %73 : f32 to vector<2x16x32xf32>
    %75 = arith.mulf %0, %74 : vector<2x16x32xf32>
    %c2_12 = arith.constant 2 : index
    %76 = memref.load %arg4[%c2_12] : memref<3xf32, #tpu.memory_space<smem>>
    %77 = vector.broadcast %76 : f32 to vector<2x16x32xf32>
    %78 = arith.addf %75, %77 : vector<2x16x32xf32>
    %79 = arith.subf %78, %26 : vector<2x16x32xf32>
    %80 = math.exp %79 : vector<2x16x32xf32>
    %81 = arith.addf %62, %80 : vector<2x16x32xf32>
    %cst_13 = arith.constant 0.142857149 : f32
    %82 = vector.broadcast %cst_13 : f32 to vector<2x16x32xf32>
    %83 = arith.mulf %80, %82 : vector<2x16x32xf32>
    %84 = arith.mulf %72, %83 : vector<2x16x32xf32>
    %85 = arith.addf %66, %84 : vector<2x16x32xf32>
    %86 = arith.divf %85, %81 : vector<2x16x32xf32>
    %c0_14 = arith.constant 0 : index
    %c0_15 = arith.constant 0 : index
    %c0_16 = arith.constant 0 : index
    %87 = vector.load %arg6[%c0_14, %c0_15, %c0_16] : memref<2x16x32xf32, #tpu.memory_space<vmem>>, vector<2x16x32xf32>
    tpu.vector_store %arg6[%c0_14, %c0_15, %c0_16], %86 {strides = array<i32>} : memref<2x16x32xf32, #tpu.memory_space<vmem>>, vector<2x16x32xf32>,
    %88 = arith.subf %0, %86 : vector<2x16x32xf32>
    %c0_17 = arith.constant 0 : index
    %c0_18 = arith.constant 0 : index
    %c0_19 = arith.constant 0 : index
    %89 = vector.load %arg5[%c0_17, %c0_18, %c0_19] : memref<2x16x32xf32, #tpu.memory_space<vmem>>, vector<2x16x32xf32>
    tpu.vector_store %arg5[%c0_17, %c0_18, %c0_19], %88 {strides = array<i32>} : memref<2x16x32xf32, #tpu.memory_space<vmem>>, vector<2x16x32xf32>,
    return
  }
  func.func @transform_0(%arg0: i32, %arg1: i32) -> (i32, i32, i32) {
    %c0_i32 = arith.constant 0 : i32
    %c0_i32_0 = arith.constant 0 : i32
    return %arg0, %c0_i32, %arg1 : i32, i32, i32
  }
  func.func @transform_1(%arg0: i32, %arg1: i32) -> i32 {
    %c0_i32 = arith.constant 0 : i32
    %c0_i32_0 = arith.constant 0 : i32
    return %c0_i32 : i32
  }
  func.func @transform_2(%arg0: i32, %arg1: i32) -> i32 {
    %c0_i32 = arith.constant 0 : i32
    %c0_i32_0 = arith.constant 0 : i32
    return %c0_i32 : i32
  }
  func.func @transform_3(%arg0: i32, %arg1: i32) -> (i32, i32, i32) {
    %c0_i32 = arith.constant 0 : i32
    %c0_i32_0 = arith.constant 0 : i32
    return %arg0, %c0_i32, %arg1 : i32, i32, i32
  }
  func.func @transform_4(%arg0: i32, %arg1: i32) -> (i32, i32, i32) {
    %c0_i32 = arith.constant 0 : i32
    %c0_i32_0 = arith.constant 0 : i32
    return %arg0, %c0_i32, %arg1 : i32, i32, i32
  }
}

</mosaic_0001>

<bundles_post_ra>
// kernel: tpu_custom_call.1
= control target key start
LH: loop header
LB: loop body
LE: loop exit
PB: predicated region body
PF: predicated region fallthrough
CT: control target
= control target key end

     0   :  { %10 = vsyncpa [#allocation3], 0  ;;  %s776_s0 = inlined_call_operand.hbm [shape: f32[2,16,32], index: 0, kind: input, shape index: {}]   ;;  %s777_s1 = inlined_call_operand.vmem [shape: f32[3], index: 1, kind: input, shape index: {}]   ;;  %s778_s2 = inlined_call_operand.vmem [shape: f32[3], index: 2, kind: input, shape index: {}]   ;;  %s779_s3 = inlined_call_operand.hbm [shape: f32[2,16,32], index: 3, kind: output, shape index: {0}]   ;;  %s780_s4 = inlined_call_operand.hbm [shape: f32[2,16,32], index: 4, kind: output, shape index: {1}]  }
   0x1   :  { %11 = vsyncpa [#allocation5], 0 }
   0x2   :  { %12 = vsyncpa [#allocation8], 0 }
   0x3   :  { %13 = vsyncpa [#allocation4], 0 }
   0x4   :  { %14 = vsyncpa [#allocation11], 0  ;;  %s502_s15 = smov [#allocation2]   ;;  %s33_s19 = sshll.u32 %s777_s1, 4  ;;  %s34_s19 = int_to_ptr.vmem [resolvable:$true] %s33_s19 }
   0x5   :  { %s20_s16 = sshll.u32 %s502_s15, 4  ;;  %s402_s22 = scalar_lea.hbm %s776_s0, 512  ;;  %s21_s16 = int_to_ptr.vmem [resolvable:$true] %s20_s16 }
   0x6   :  { %p403_p0 = scmp.ne.s32.totalorder %s776_s0, %s402_s22  ;;  %p406_p1 = scmp.lt.u32.totalorder %s402_s22, %s776_s0 }
   0x8   :  { %p408_p2 = pnand %p406_p1, %p403_p0 }
   0xa   :  { %411 = shalt.err (!%p408_p2)
}
   0xb   :  { %s412_s27 = scalar_lea.vmem %s21_s16, 512  ;;  %p417_p4 = scmp.lt.s32.totalorder %s21_s16, %s21_s16 }
   0xc   :  { %p413_p3 = scmp.ne.s32.totalorder %s21_s16, %s412_s27  ;;  %p418_p5 = scmp.lt.s32.totalorder %s412_s27, %s412_s27 }
   0xe   :  { %p419_p6 = por %p418_p5, %p417_p4 }
  0x10   :  { %p420_p7 = pnand %p419_p6, %p413_p3 }
  0x12   :  { %423 = shalt.err (!%p420_p7)
}
  0x13   :  { %s503_s1 = smov 128   ;;  %s504_s28 = smov 8  }
  0x14   :  { %26 = dma.hbm_to_vmem [thread:$0]  %s776_s0, 512, %s21_s16, [#allocation3], %s503_s1, %s503_s1, %s504_s28  }
  0x15   :  { %s424_s5 = scalar_lea.vmem %s34_s19, 16  ;;  %p429_p9 = scmp.lt.s32.totalorder %s34_s19, %s34_s19 }
  0x16   :  { %p425_p8 = scmp.ne.s32.totalorder %s34_s19, %s424_s5  ;;  %p430_p10 = scmp.lt.s32.totalorder %s424_s5, %s424_s5 }
  0x18   :  { %p431_p11 = por %p430_p10, %p429_p9 }
  0x1a   :  { %p432_p12 = pnand %p431_p11, %p425_p8 }
  0x1c   :  { %435 = shalt.err (!%p432_p12)
}
  0x1d   :  { %s505_s6 = smov [#allocation6]   ;;  %s43_s9 = sshll.u32 %s778_s2, 4  ;;  %s44_s9 = int_to_ptr.vmem [resolvable:$true] %s43_s9 }
  0x1e   :  { %36 = dma.vmem_to_smem %s34_s19, 16, %s505_s6, [#allocation5]  }
  0x1f   :  { %s436_s10 = scalar_lea.vmem %s44_s9, 16  ;;  %p441_p0 = scmp.lt.s32.totalorder %s44_s9, %s44_s9 }
  0x20   :  { %p437_p13 = scmp.ne.s32.totalorder %s44_s9, %s436_s10  ;;  %p442_p1 = scmp.lt.s32.totalorder %s436_s10, %s436_s10 }
  0x22   :  { %p443_p2 = por %p442_p1, %p441_p0 }
  0x24   :  { %p444_p3 = pnand %p443_p2, %p437_p13 }
  0x26   :  { %447 = shalt.err (!%p444_p3)
}
  0x27   :  { %s506_s0 = smov [#allocation7]  }
  0x28   :  { %46 = dma.vmem_to_smem %s44_s9, 16, %s506_s0, [#allocation8]  }
  0x29   :  { %492 = dma.done.wait [#allocation3], 512  }
  0x2a   :  { %493 = vsyncadd [#allocation3], 4294966784 }
  0x2b   :  { %494 = dma.done.wait [#allocation5], 16  }
  0x2c   :  { %495 = vsyncadd [#allocation5], 4294967280 }
  0x2d   :  { %496 = dma.done.wait [#allocation8], 16  }
  0x2e   :  { %497 = vsyncadd [#allocation8], 4294967280 }
  0x2f   :  { %56 = sfence }
  0x30   :  { %v555_v0 = vld [vmem:[#allocation2] sm:$0xff]  ;;  %v557_v1 = vld [vmem:[#allocation2 + $0x8] sm:$0xff]  ;;  %v61_v2 = vlaneseq  ;;  %s77_s2 = sld [smem:[#allocation6]]  ;;  %s359_s12 = sld [smem:[#allocation6 + $0x1]]  ;;  %vm125_vm0 = vcmask 1040384   ;;  %vm142_vm1 = vcmask 1046528  }
  0x31   :  { %s83_s11 = sld [smem:[#allocation7]]  ;;  %s360_s13 = sld [smem:[#allocation7 + $0x1]]  ;;  %v126_v3 = vrot.slane %v555_v0, 7  ;;  %v143_v6 = vrot.slane %v555_v0, 1  ;;  %v144_v7 = vrot.slane %v557_v1, 1  ;;  %v180_v10 = vrot.slane %v555_v0, 6 }
  0x32   :  { %v560_v4 = vshrl.u32 %v61_v2, 7  ;;  %s361_s14 = sld [smem:[#allocation6 + $0x2]]  ;;  %vm179_vm2 = vcmask 1041408   ;;  %v197_v12 = vrot.slane %v555_v0, 2  ;;  %v198_v13 = vrot.slane %v557_v1, 2  ;;  %v628_v57 = vld [vmem:[#allocation2 + $0x10] sm:$0xff] }
  0x33   :  { %s362_s15 = sld [smem:[#allocation7 + $0x2]]  ;;  %v136_v5 = vsel %vm125_vm0, %v555_v0, %v126_v3  ;;  %v145_v11 = vsel %vm142_vm1, %v143_v6, %v144_v7  ;;  %vm196_vm3 = vcmask 1045504   ;;  %v242_v30 = vrot.slane %v555_v0, 5  ;;  %s507_s16 = smov [#allocation10]  }
  0x34   :  { %v63_v8 = vsub.s32 0, %v560_v4  ;;  %v138_v9 = vadd.f32 %v136_v5, %v555_v0  ;;  %v199_v29 = vsel %vm196_vm3, %v197_v12, %v198_v13  ;;  %vm241_vm4 = vcmask 1042432   ;;  %s341_s17 = sshll.u32 %s507_s16, 4  ;;  %s508_s18 = smov [#allocation9]   ;;  %s342_s17 = int_to_ptr.vmem [resolvable:$true] %s341_s17 }
  0x35   :  { %vm258_vm5 = vcmask 1044480   ;;  %v259_v32 = vrot.slane %v555_v0, 3  ;;  %v260_v34 = vrot.slane %v557_v1, 3  ;;  %v71_v35 = vsub.s32 7, %v560_v4  ;;  %s329_s19 = sshll.u32 %s508_s18, 4  ;;  %s448_s20 = scalar_lea.vmem %s342_s17, 512  ;;  %s738_s19 = int_to_ptr.vmem [resolvable:$true] %s329_s19 }
  0x36   :  { %v64_v14 = vrot.slane %v555_v0, %v63_v8  ;;  %v575_v15 = vstv %s77_s2  ;;  %v579_v17 = vadd.f32 %v145_v11, %v138_v9  ;;  %v583_v19 = vstv %s359_s12  ;;  %p449_p4 = scmp.ne.s32.totalorder %s342_s17, %s448_s20  ;;  %p453_p5 = scmp.lt.s32.totalorder %s342_s17, %s342_s17 }
  0x37   :  { %v577_v16 = vstv %s83_s11  ;;  %v79_v18 = vmul.f32 %v575_v15, %v555_v0  ;;  %v585_v20 = vstv %s360_s13  ;;  %v91_v21 = vmul.f32 %v583_v19, %v555_v0  ;;  %p454_p6 = scmp.lt.s32.totalorder %s448_s20, %s448_s20 }
  0x38   :  { %v589_v22 = vstv %s361_s14  ;;  %v190_v24 = vsel %vm179_vm2, %v64_v14, %v180_v10  ;;  %v80_v36 = vmul.f32 %v575_v15, %v557_v1  ;;  %v92_v38 = vmul.f32 %v583_v19, %v557_v1 }
  0x39   :  { %v591_v23 = vstv %s362_s15  ;;  %v85_v25 = vadd.f32 %v577_v16, %v79_v18  ;;  %v107_v26 = vmul.f32 %v589_v22, %v555_v0  ;;  %v192_v27 = vadd.f32 %v190_v24, %v579_v17  ;;  %p455_p7 = por %p454_p6, %p453_p5 }
  0x3a   :  { %v97_v28 = vadd.f32 %v585_v20, %v91_v21  ;;  %v108_v39 = vmul.f32 %v589_v22, %v557_v1  ;;  %v127_v40 = vrot.slane %v557_v1, 7  ;;  %v252_v42 = vsel %vm241_vm4, %v64_v14, %v242_v30 }
  0x3b   :  { %v113_v31 = vadd.f32 %v591_v23, %v107_v26  ;;  %v607_v37 = vadd.f32 %v199_v29, %v192_v27  ;;  %v72_v43 = vrot.slane %v557_v1, %v71_v35  ;;  %v86_v44 = vadd.f32 %v577_v16, %v80_v36  ;;  %v646_v26 = vld [vmem:[#allocation2 + $0x18] sm:$0xff]  ;;  %p456_p8 = pnand %p455_p7, %p449_p4 }
  0x3c   :  { %v101_v33 = vmax.f32 %v85_v25, %v97_v28  ;;  %v98_v45 = vadd.f32 %v585_v20, %v92_v38  ;;  %v114_v46 = vadd.f32 %v591_v23, %v108_v39  ;;  %v128_v47 = vsel %vm125_vm0, %v126_v3, %v127_v40 }
  0x3d   :  { %v153_v48 = vsel %vm142_vm1, %v144_v7, %v557_v1  ;;  %v139_v52 = vadd.f32 %v128_v47, %v557_v1  ;;  %v261_v53 = vsel %vm258_vm5, %v259_v32, %v260_v34  ;;  %v181_v55 = vrot.slane %v557_v1, 6 }
  0x3e   :  { %v117_v41 = vmax.f32 %v101_v33, %v113_v31  ;;  %v102_v54 = vmax.f32 %v86_v44, %v98_v45  ;;  %v243_v56 = vrot.slane %v557_v1, 5  ;;  %v254_v62 = vadd.f32 %v252_v42, %v607_v37 }
  0x3f   :  { %v630_v61 = vadd.f32 %v153_v48, %v139_v52  ;;  %v182_v2 = vsel %vm179_vm2, %v180_v10, %v181_v55  ;;  %v207_v3 = vsel %vm196_vm3, %v198_v13, %v72_v43  ;;  %v81_v7 = vmul.f32 %v575_v15, %v628_v57 }
  0x40   :  { %v159_v49 = vsub.f32 %v85_v25, %v117_v41  ;;  %v213_v50 = vsub.f32 %v97_v28, %v117_v41  ;;  %v275_v51 = vsub.f32 %v113_v31, %v117_v41  ;;  %v118_v63 = vmax.f32 %v102_v54, %v114_v46 }
  0x41   :  { %v193_v5 = vadd.f32 %v182_v2, %v630_v61  ;;  %v244_v6 = vsel %vm241_vm4, %v242_v30, %v243_v56  ;;  %v87_v18 = vadd.f32 %v577_v16, %v81_v7  ;;  %v93_v10 = vmul.f32 %v583_v19, %v628_v57 }
  0x42   :  { %v163_v58 = vmul.f32 1.442695, %v159_v49  ;;  %v217_v59 = vmul.f32 1.442695, %v213_v50  ;;  %v279_v60 = vmul.f32 1.442695, %v275_v51  ;;  %v160_v9 = vsub.f32 %v86_v44, %v118_v63 }
  0x43   :  { %v214_v11 = vsub.f32 %v98_v45, %v118_v63  ;;  %v276_v12 = vsub.f32 %v114_v46, %v118_v63  ;;  %v639_v14 = vadd.f32 %v207_v3, %v193_v5  ;;  %v109_v25 = vmul.f32 %v589_v22, %v628_v57 }
  0x44   :  { %370 = vpow2.f32 %v163_v58  ;;  %v165_v13 = vmul.f32 1.442695, %v160_v9  ;;  %v68_v27 = vrot.slane %v628_v57, %v63_v8  ;;  %v99_v28 = vadd.f32 %v585_v20, %v93_v10 }
  0x45   :  { %372 = vpow2.f32 %v217_v59  ;;  %v219_v21 = vmul.f32 1.442695, %v214_v11  ;;  %v281_v24 = vmul.f32 1.442695, %v276_v12  ;;  %v129_v29 = vrot.slane %v628_v57, 7 }
  0x46   :  { %374 = vpow2.f32 %v279_v60  ;;  %v146_v30 = vrot.slane %v628_v57, 1  ;;  %v115_v31 = vadd.f32 %v591_v23, %v109_v25  ;;  %v147_v32 = vrot.slane %v646_v26, 1 }
  0x47   :  { %376 = vpow2.f32 %v165_v13  ;;  %v183_v33 = vrot.slane %v628_v57, 6  ;;  %v255_v36 = vadd.f32 %v244_v6, %v639_v14  ;;  %v103_v38 = vmax.f32 %v87_v18, %v99_v28 }
  0x48   :  { %378 = vpow2.f32 %v219_v21  ;;  %v137_v8 = vsel %vm125_vm0, %v628_v57, %v129_v29  ;;  %v269_v39 = vsel %vm258_vm5, %v260_v34, %v72_v43  ;;  %v148_v41 = vsel %vm142_vm1, %v146_v30, %v147_v32 }
  0x49   :  { %380 = vpow2.f32 %v281_v24  ;;  %v140_v40 = vadd.f32 %v137_v8, %v628_v57  ;;  %v119_v42 = vmax.f32 %v103_v38, %v115_v31  ;;  %v191_v44 = vsel %vm179_vm2, %v68_v27, %v183_v33 }
  0x4a   :  { %v271_v45 = vadd.f32 %v261_v53, %v254_v62  ;;  %v200_v47 = vrot.slane %v628_v57, 2  ;;  %v201_v48 = vrot.slane %v646_v26, 2  ;;  %v272_v43 = vadd.f32 %v269_v39, %v255_v36 }
  0x4b   :  { %v670_v46 = vadd.f32 %v148_v41, %v140_v40  ;;  %v161_v49 = vsub.f32 %v87_v18, %v119_v42  ;;  %v215_v50 = vsub.f32 %v99_v28, %v119_v42  ;;  %v245_v51 = vrot.slane %v628_v57, 5 }
  0x4c   :  { %v262_v56 = vrot.slane %v628_v57, 3  ;;  %v277_v58 = vsub.f32 %v115_v31, %v119_v42  ;;  %v202_v5 = vsel %vm196_vm3, %v200_v47, %v201_v48  ;;  %v82_v11 = vmul.f32 %v575_v15, %v646_v26 }
  0x4d   :  { %v194_v55 = vadd.f32 %v191_v44, %v670_v46  ;;  %v167_v62 = vmul.f32 1.442695, %v161_v49  ;;  %v221_v63 = vmul.f32 1.442695, %v215_v50  ;;  %v253_v18 = vsel %vm241_vm4, %v68_v27, %v245_v51 }
  0x4e   :  { %v371_v34 = vpop.eup %370  ;;  %v283_v6 = vmul.f32 1.442695, %v277_v58  ;;  %v94_v10 = vmul.f32 %v583_v19, %v646_v26  ;;  %v88_v24 = vadd.f32 %v577_v16, %v82_v11  ;;  %v110_v39 = vmul.f32 %v589_v22, %v646_v26 }
  0x4f   :  { %v373_v52 = vpop.eup %372  ;;  %v171_v54 = vmul.f32 0.33333334, %v371_v34  ;;  %382 = vpow2.f32 %v167_v62  ;;  %v130_v40 = vrot.slane %v646_v26, 7  ;;  %vm311_vm6 = vcmask 261120  }
  0x50   :  { %v375_v53 = vpop.eup %374  ;;  %v225_v59 = vadd.f32 %v373_v52, %v371_v34  ;;  %v229_v60 = vmul.f32 0.2, %v373_v52  ;;  %384 = vpow2.f32 %v221_v63  ;;  %v100_v38 = vadd.f32 %v585_v20, %v94_v10 }
  0x51   :  { %v175_v2 = vmul.f32 %v171_v54, %v579_v17  ;;  %v291_v3 = vmul.f32 0.14285715, %v375_v53  ;;  %v377_v12 = vpop.eup %376  ;;  %v263_v17 = vrot.slane %v646_v26, 3  ;;  %v116_v41 = vadd.f32 %v591_v23, %v110_v39 }
  0x52   :  { %v233_v7 = vmul.f32 %v229_v60, %v607_v37  ;;  %v287_v9 = vadd.f32 %v375_v53, %v225_v59  ;;  %v379_v13 = vpop.eup %378  ;;  %v172_v21 = vmul.f32 0.33333334, %v377_v12  ;;  %v211_v37 = vadd.f32 %v202_v5, %v194_v55 }
  0x53   :  { %v381_v25 = vpop.eup %380  ;;  %v295_v28 = vmul.f32 %v291_v3, %v271_v45  ;;  %v226_v15 = vadd.f32 %v379_v13, %v377_v12  ;;  %v230_v30 = vmul.f32 0.2, %v379_v13  ;;  %v104_v16 = vmax.f32 %v88_v24, %v100_v38 }
  0x54   :  { %386 = vrcp.f32 %v287_v9  ;;  %v237_v31 = vadd.f32 %v233_v7, %v175_v2  ;;  %v176_v36 = vmul.f32 %v172_v21, %v630_v61  ;;  %v292_v27 = vmul.f32 0.14285715, %v381_v25 }
  0x55   :  { %388 = vpow2.f32 %v283_v6  ;;  %v234_v8 = vmul.f32 %v230_v30, %v639_v14  ;;  %v288_v19 = vadd.f32 %v381_v25, %v226_v15  ;;  %v131_v42 = vsel %vm125_vm0, %v129_v29, %v130_v40 }
  0x56   :  { %v256_v61 = vadd.f32 %v253_v18, %v211_v37  ;;  %v264_v20 = vsel %vm258_vm5, %v262_v56, %v263_v17  ;;  %v299_v14 = vadd.f32 %v295_v28, %v237_v31  ;;  %v296_v45 = vmul.f32 %v292_v27, %v272_v43 }
  0x57   :  { %390 = vrcp.f32 %v288_v19  ;;  %v238_v44 = vadd.f32 %v234_v8, %v176_v36  ;;  %v120_v47 = vmax.f32 %v104_v16, %v116_v41  ;;  %v141_v34 = vadd.f32 %v131_v42, %v646_v26 }
  0x58   :  { %v154_v23 = vsel %vm142_vm1, %v147_v32, %v646_v26  ;;  %v273_v53 = vadd.f32 %v264_v20, %v256_v61  ;;  %v184_v43 = vrot.slane %v646_v26, 6  ;;  %v76_v12 = vrot.slane %v646_v26, %v71_v35 }
  0x59   :  { %v383_v22 = vpop.eup %382  ;;  %v162_v50 = vsub.f32 %v88_v24, %v120_v47  ;;  %v216_v52 = vsub.f32 %v100_v38, %v120_v47  ;;  %v278_v54 = vsub.f32 %v116_v41, %v120_v47  ;;  %v300_v62 = vadd.f32 %v296_v45, %v238_v44 }
  0x5a   :  { %v385_v49 = vpop.eup %384  ;;  %v173_v29 = vmul.f32 0.33333334, %v383_v22  ;;  %v158_v6 = vadd.f32 %v154_v23, %v141_v34  ;;  %v185_v18 = vsel %vm179_vm2, %v183_v33, %v184_v43  ;;  %v246_v4 = vrot.slane %v646_v26, 5 }
  0x5b   :  { %v227_v56 = vadd.f32 %v385_v49, %v383_v22  ;;  %v231_v58 = vmul.f32 0.2, %v385_v49  ;;  %v169_v63 = vmul.f32 1.442695, %v162_v50  ;;  %v223_v2 = vmul.f32 1.442695, %v216_v52 }
  0x5c   :  { %v177_v3 = vmul.f32 %v173_v29, %v670_v46  ;;  %v285_v9 = vmul.f32 1.442695, %v278_v54  ;;  %v247_v25 = vsel %vm241_vm4, %v245_v51, %v246_v4 }
  0x5d   :  { %v235_v5 = vmul.f32 %v231_v58, %v211_v37  ;;  %392 = vpow2.f32 %v169_v63  ;;  %v195_v37 = vadd.f32 %v185_v18, %v158_v6 }
  0x5e   :  { %v387_v55 = vpop.eup %386 }
  0x5f   :  { %v389_v59 = vpop.eup %388  ;;  %v304_v60 = vmul.f32 %v387_v55, %v299_v14  ;;  %v239_v13 = vadd.f32 %v235_v5, %v177_v3 }
  0x60   :  { %v289_v32 = vadd.f32 %v389_v59, %v227_v56  ;;  %v293_v7 = vmul.f32 0.14285715, %v389_v59 }
  0x61   :  { %312 = vst.msk [vmem:[#allocation10] sm:$0xff] %vm311_vm6, %v304_v60  ;;  %v316_v11 = vsub.f32 %v555_v0, %v304_v60  ;;  %v391_v46 = vpop.eup %390  ;;  %v208_v0 = vsel %vm196_vm3, %v201_v48, %v76_v12 }
  0x62   :  { %394 = vrcp.f32 %v289_v32  ;;  %v306_v10 = vmul.f32 %v391_v46, %v300_v62  ;;  %v297_v21 = vmul.f32 %v293_v7, %v273_v53  ;;  %v212_v24 = vadd.f32 %v208_v0, %v195_v37 }
  0x63   :  { %396 = vpow2.f32 %v223_v2  ;;  %320 = vst.msk [vmem:[#allocation9] sm:$0xff] %vm311_vm6, %v316_v11 }
  0x64   :  { %398 = vpow2.f32 %v285_v9  ;;  %313 = vst.msk [vmem:[#allocation10 + $0x8] sm:$0xff] %vm311_vm6, %v306_v10  ;;  %v317_v35 = vsub.f32 %v557_v1, %v306_v10  ;;  %v301_v33 = vadd.f32 %v297_v21, %v239_v13  ;;  %v257_v27 = vadd.f32 %v247_v25, %v212_v24 }
  0x65   :  { %v270_v1 = vsel %vm258_vm5, %v263_v17, %v76_v12 }
  0x66   :  { %321 = vst.msk [vmem:[#allocation9 + $0x8] sm:$0xff] %vm311_vm6, %v317_v35  ;;  %v274_v16 = vadd.f32 %v270_v1, %v257_v27 }
  0x67   :  { %v393_v28 = vpop.eup %392 }
  0x68   :  { %v174_v36 = vmul.f32 0.33333334, %v393_v28 }
  0x6a   :  { %v178_v40 = vmul.f32 %v174_v36, %v158_v6 }
  0x6c   :  { %v395_v15 = vpop.eup %394 }
  0x6d   :  { %v397_v30 = vpop.eup %396  ;;  %v308_v31 = vmul.f32 %v395_v15, %v301_v33 }
  0x6e   :  { %v399_v38 = vpop.eup %398  ;;  %v228_v48 = vadd.f32 %v397_v30, %v393_v28  ;;  %v232_v8 = vmul.f32 0.2, %v397_v30 }
  0x6f   :  { %314 = vst.msk [vmem:[#allocation10 + $0x10] sm:$0xff] %vm311_vm6, %v308_v31  ;;  %v318_v19 = vsub.f32 %v628_v57, %v308_v31  ;;  %v294_v41 = vmul.f32 0.14285715, %v399_v38 }
  0x70   :  { %v290_v39 = vadd.f32 %v399_v38, %v228_v48  ;;  %v236_v51 = vmul.f32 %v232_v8, %v212_v24 }
  0x71   :  { %322 = vst.msk [vmem:[#allocation9 + $0x10] sm:$0xff] %vm311_vm6, %v318_v19  ;;  %v298_v61 = vmul.f32 %v294_v41, %v274_v16 }
  0x72   :  { %400 = vrcp.f32 %v290_v39  ;;  %v240_v42 = vadd.f32 %v236_v51, %v178_v40 }
  0x74   :  { %v302_v20 = vadd.f32 %v298_v61, %v240_v42 }
  0x7c   :  { %v401_v14 = vpop.eup %400 }
  0x7d   :  { %v310_v17 = vmul.f32 %v401_v14, %v302_v20 }
  0x7f   :  { %315 = vst.msk [vmem:[#allocation10 + $0x18] sm:$0xff] %vm311_vm6, %v310_v17  ;;  %v319_v57 = vsub.f32 %v646_v26, %v310_v17 }
  0x80   :  { %459 = shalt.err (!%p456_p8)
}
  0x81   :  { %s460_s23 = scalar_lea.hbm %s780_s4, 512 }
  0x82   :  { %p461_p9 = scmp.ne.s32.totalorder %s780_s4, %s460_s23  ;;  %p464_p10 = scmp.lt.u32.totalorder %s460_s23, %s780_s4 }
  0x84   :  { %p466_p11 = pnand %p464_p10, %p461_p9 }
  0x86   :  { %469 = shalt.err (!%p466_p11)
}
  0x87   :  { %347 = dma.vmem_to_hbm [thread:$0]  %s342_s17, 512, %s780_s4, [#allocation11], %s503_s1, %s503_s1, %s504_s28   ;;  %323 = vst.msk [vmem:[#allocation9 + $0x18] sm:$0xff] %vm311_vm6, %v319_v57 }
  0x88   :  { %s470_s5 = scalar_lea.vmem %s738_s19, 512  ;;  %p475_p13 = scmp.lt.s32.totalorder %s738_s19, %s738_s19 }
  0x89   :  { %p471_p12 = scmp.ne.s32.totalorder %s738_s19, %s470_s5  ;;  %p476_p0 = scmp.lt.s32.totalorder %s470_s5, %s470_s5 }
  0x8b   :  { %p477_p1 = por %p476_p0, %p475_p13 }
  0x8d   :  { %p478_p2 = pnand %p477_p1, %p471_p12 }
  0x8f   :  { %481 = shalt.err (!%p478_p2)
}
  0x90   :  { %s482_s8 = scalar_lea.hbm %s779_s3, 512 }
  0x91   :  { %p483_p3 = scmp.ne.s32.totalorder %s779_s3, %s482_s8  ;;  %p486_p4 = scmp.lt.u32.totalorder %s482_s8, %s779_s3 }
  0x93   :  { %p488_p5 = pnand %p486_p4, %p483_p3 }
  0x95   :  { %491 = shalt.err (!%p488_p5)
}
  0x96   :  { %335 = dma.vmem_to_hbm [thread:$0]  %s738_s19, 512, %s779_s3, [#allocation4], %s503_s1, %s503_s1, %s504_s28  }
  0x97   :  { %498 = dma.done.wait [#allocation4], 512  }
  0x98   :  { %499 = vsyncadd [#allocation4], 4294966784 }
  0x99   :  { %500 = dma.done.wait [#allocation11], 512  }
  0x9a   :  { %501 = vsyncadd [#allocation11], 4294966784 }
  0x9b   :  { %354 = vsyncpa [#allocation3], 1 }
  0x9c   :  { %355 = vsyncpa [#allocation4], 1 }
  0x9d   :  { %356 = vsyncpa [#allocation11], 1 }
  0x9e   :  { %357 = vsyncpa [#allocation5], 1 }
  0x9f   :  { %358 = vsyncpa [#allocation8], 1 }

</bundles_post_ra>
